<compile_context>
chip_gen: v5e
topology: v5e:2x2
jax: 0.10.0
libtpu: 0.0.40
codegen_flags: <defaults>
</compile_context>

<pallas_src>
import jax
import jax.numpy as jnp
import numpy as np
from jax.experimental import pallas as pl
from jax.experimental.pallas import tpu as pltpu

HID_DIM = 32
N_HEADS = 4
HEAD_DIM = HID_DIM // N_HEADS
N_HEADS_PAD = 8                      # head axis padded to 8 (zero cols/rows, no effect)
PF_DIM = 64
SCALE = float(np.sqrt(HEAD_DIM))
INV_SCALE = 1.0 / SCALE
NEG_BIAS = -1e10
LN_EPS = 1e-5

# test-problem sizes
B = 2
L_SRC = 8

# ---- packed-parameter slabs: each matrix in its own 128-lane tile ----------
SLAB_TILE = 128
SLAB_ROWS = max(HID_DIM, PF_DIM)                       # 64
(W_Q_COL, W_DEC_COL, W_K_COL, W_V_COL, W_ENCO_COL,
 FF_W1_COL, FF_W2_COL, SEG_COL, SEGT_COL) = [i * SLAB_TILE for i in range(9)]
W_SLAB_SHAPE = (SLAB_ROWS, 9 * SLAB_TILE)              # [64, 1152]
B_SLAB_SHAPE = (16, SLAB_TILE)                         # [16, 128]

# batch-tile sizing: rough per-element VMEM working set (double-buffered blocks
# + 128-lane-padded f32 intermediates), and the budget it is allowed to fill.
_PER_ELEM_VMEM_BYTES = 64 * 1024
_BATCH_VMEM_BUDGET = 24 << 20


# --------------------------------------------------------------------------
# Shared helper (pure jnp; used by both the kernel and the reference)
# --------------------------------------------------------------------------
def _layer_norm(x, g, b):
    mu = jnp.mean(x, axis=-1, keepdims=True)
    var = jnp.mean(jnp.square(x - mu), axis=-1, keepdims=True)
    return (x - mu) * jax.lax.rsqrt(var + LN_EPS) * g + b


# --------------------------------------------------------------------------
# Kernel
# --------------------------------------------------------------------------
def _dca_kernel(trg_ref, enc_ref, maskb_ref, w_ref, b_ref, out_ref):
    f32 = jnp.float32
    trg = trg_ref[...]                         # [bt, H]      f32
    enc2 = enc_ref[...]                        # [bt*L, H]    compute dtype
    mask_bias = maskb_ref[...]                 # [bt, L]      f32: 0 keep / -1e10 masked
    bt = trg.shape[0]
    l = mask_bias.shape[1]

    def _wt(col, rows, cols):                  # static, lane-0-aligned slab views
        return w_ref[0:rows, col:col + cols]

    def _brow(r, n):
        return b_ref[r:r + 1, 0:n]

    w_q = _wt(W_Q_COL, HID_DIM, HID_DIM)
    w_dec = _wt(W_DEC_COL, HID_DIM, HID_DIM)       # folded self-attn -> fc bottom half
    w_k = _wt(W_K_COL, HID_DIM, HID_DIM)
    w_v = _wt(W_V_COL, HID_DIM, HID_DIM)
    w_enc_o = _wt(W_ENCO_COL, HID_DIM, HID_DIM)    # e_wo @ fc_w_top
    ff_w1 = _wt(FF_W1_COL, HID_DIM, PF_DIM)
    ff_w2 = _wt(FF_W2_COL, PF_DIM, HID_DIM)
    seg = _wt(SEG_COL, HID_DIM, N_HEADS_PAD)       # 0/1 head-membership (head-sum)
    seg_t = _wt(SEGT_COL, N_HEADS_PAD, HID_DIM)    # 0/1 head-expand

    b_q, b_dec = _brow(0, HID_DIM), _brow(1, HID_DIM)
    b_k, b_v = _brow(2, HID_DIM), _brow(3, HID_DIM)
    b_fused = _brow(4, HID_DIM)
    ff_b1 = _brow(5, PF_DIM)
    ff_b2 = _brow(6, HID_DIM)
    ln_g, ln_b = _brow(7, HID_DIM), _brow(8, HID_DIM)

    # ---- projections (separate K=32 matmuls: every output is lane-0 aligned) ----
    q = jnp.dot(trg, w_q, preferred_element_type=f32) + b_q                # [bt, H]
    dec_path = jnp.dot(trg, w_dec, preferred_element_type=f32) + b_dec     # [bt, H]
    k2 = jnp.dot(enc2, w_k, preferred_element_type=f32) + b_k              # [bt*L, H]
    v2 = jnp.dot(enc2, w_v, preferred_element_type=f32) + b_v              # [bt*L, H]
    k = k2.reshape(bt, l, HID_DIM)
    v = v2.reshape(bt, l, HID_DIM)

    # ---- encoder attention, query length 1, all heads via block-diag head-sum ----
    prod = q[:, None, :] * k                                               # [bt, L, H]
    energy = jnp.dot(prod.reshape(bt * l, HID_DIM), seg,
                     preferred_element_type=f32).reshape(bt, l, N_HEADS_PAD)
    energy = energy * INV_SCALE + mask_bias[:, :, None]                    # additive mask
    m = jnp.max(energy, axis=1, keepdims=True)                             # softmax over L
    p = jnp.exp(energy - m)
    attn = p * pl.reciprocal(jnp.sum(p, axis=1, keepdims=True), approx=True)
    attn_full = jnp.dot(attn.reshape(bt * l, N_HEADS_PAD), seg_t,
                        preferred_element_type=f32).reshape(bt, l, HID_DIM)
    attn_out = jnp.sum(attn_full * v, axis=1)                              # [bt, H]

    # ---- gated fusion (fc folded with e_wo and the self-attn value path) ----
    # TODO(synk): nn.Dropout layers are identity here (inference mode); train-time
    # attention-weight / residual dropout is not implemented.
    fused = jnp.maximum(
        jnp.dot(attn_out, w_enc_o, preferred_element_type=f32) + dec_path + b_fused, 0.0)
    y1 = _layer_norm(trg + fused, ln_g, ln_b)

    # ---- positionwise feedforward + residual LN (same LN params, as in torch) ----
    hidden = jnp.maximum(jnp.dot(y1, ff_w1, preferred_element_type=f32) + ff_b1, 0.0)
    ff = jnp.dot(hidden, ff_w2, preferred_element_type=f32) + ff_b2
    out_ref[...] = _layer_norm(y1 + ff, ln_g, ln_b).astype(out_ref.dtype)


# --------------------------------------------------------------------------
# Host-side parameter folding + packing (do once and cache in real use)
# --------------------------------------------------------------------------
def pack_params(params, compute_dtype=jnp.float32):
    (e_wq, e_bq, e_wk, e_bk, e_wv, e_bv, e_wo, e_bo,
     s_wq, s_bq, s_wk, s_bk, s_wv, s_bv, s_wo, s_bo,
     fc_w, fc_b, ln_g, ln_b, ff_w1, ff_b1, ff_w2, ff_b2) = params
    del s_wq, s_bq, s_wk, s_bk   # dead: softmax over a single key is identically 1

    fc_w_top = fc_w[:HID_DIM, :]          # acts on trg_enc
    fc_w_bot = fc_w[HID_DIM:, :]          # acts on trg_dec
    # self-attention branch (length-1) folded all the way into the fusion fc:
    w_dec = s_wv @ s_wo @ fc_w_bot                     # [H, H]
    b_dec = (s_bv @ s_wo + s_bo) @ fc_w_bot            # [1, H]
    # encoder-attention output projection folded into the fusion fc:
    w_enc_o = e_wo @ fc_w_top                          # [H, H]
    b_fused = e_bo @ fc_w_top + fc_b                   # [1, H]

    # block-diagonal head-sum / head-expand indicator matrices (exact in bf16),
    # padded to 8 "heads" (extra columns/rows are zero and have no effect).
    seg_np = np.zeros((HID_DIM, N_HEADS_PAD), np.float32)
    for n in range(N_HEADS):
        seg_np[n * HEAD_DIM:(n + 1) * HEAD_DIM, n] = 1.0
    seg = jnp.asarray(seg_np)                          # [H, 8]
    seg_t = jnp.asarray(seg_np.T)                      # [8, H]

    def tile(w):
        r, c = w.shape
        return jnp.pad(w, ((0, SLAB_ROWS - r), (0, SLAB_TILE - c)))

    mats = [e_wq, w_dec, e_wk, e_wv, w_enc_o, ff_w1, ff_w2, seg, seg_t]
    w_slab = jnp.concatenate([tile(m) for m in mats], axis=1).astype(compute_dtype)

    def row(v):
        v = v.reshape(1, -1)
        return jnp.pad(v, ((0, 0), (0, SLAB_TILE - v.shape[1])))

    rows = [e_bq, b_dec, e_bk, e_bv, b_fused, ff_b1, ff_b2, ln_g, ln_b]
    b_slab = jnp.concatenate(
        [row(v) for v in rows]
        + [jnp.zeros((B_SLAB_SHAPE[0] - len(rows), SLAB_TILE), jnp.float32)],
        axis=0).astype(jnp.float32)                    # biases / LN params stay f32

    assert w_slab.shape == W_SLAB_SHAPE and b_slab.shape == B_SLAB_SHAPE
    return w_slab, b_slab


# --------------------------------------------------------------------------
# Batch-tile heuristic
# --------------------------------------------------------------------------
def _pick_batch_tile(b):
    if b <= 16:
        return b                     # single full-extent block (always a legal block)
    cap = max(8, min(_BATCH_VMEM_BUDGET // _PER_ELEM_VMEM_BYTES, b // 2))
    cap = (cap // 8) * 8             # >=2 blocks so "parallel" shards across v7x's 2 TCs
    # prefer a tile that divides b exactly (no padded tail block)
    for bt in range(cap, max(8, cap // 2) - 1, -8):
        if b % bt == 0:
            return bt
    return cap


# --------------------------------------------------------------------------
# Wrapper
# --------------------------------------------------------------------------
def drug_cell_attention(trg, enc_src, trg_mask, src_mask, params, *,
                        batch_tile=None, compute_dtype=jnp.float32):
    """trg: [B, H], enc_src: [B, L, H], src_mask: [B, L] (1 keep / 0 masked)."""
    del trg_mask  # length-1 self-attention: softmax over one key is 1 regardless of mask
    b, h = trg.shape
    l = enc_src.shape[1]
    assert h == HID_DIM and enc_src.shape[2] == HID_DIM

    w_slab, b_slab = pack_params(params, compute_dtype)

    # additive mask bias, 2D so its block costs one lane tile per batch element:
    # 0.0 for kept positions, -1e10 for masked positions (matches masked_fill).
    mask_bias = jnp.where(src_mask == 0, NEG_BIAS, 0.0).astype(jnp.float32)   # [B, L]

    # ---- batch tiling (pad batch up to a tile multiple; padded rows are inert) ----
    bt = _pick_batch_tile(b) if batch_tile is None else int(batch_tile)
    if bt >= b:
        bt = b
    elif bt % 8 != 0:
        raise ValueError("batch_tile must be a multiple of 8 (or >= batch)")
    b_pad = pl.cdiv(b, bt) * bt
    if b_pad != b:
        pad = b_pad - b
        trg = jnp.pad(trg, ((0, pad), (0, 0)))
        enc_src = jnp.pad(enc_src, ((0, pad), (0, 0), (0, 0)))
        mask_bias = jnp.pad(mask_bias, ((0, pad), (0, 0)))

    trg_in = trg.astype(jnp.float32)
    enc2 = enc_src.reshape(b_pad * l, h).astype(compute_dtype)   # 2D: no in-kernel bf16 reshape
    grid = (b_pad // bt,)

    # scoped-VMEM limit: double-buffered weight slabs + per-element working set,
    # with headroom; capped at 64 MiB so the value is legal on v7x.
    est = (2 * (w_slab.size * w_slab.dtype.itemsize
                + b_slab.size * b_slab.dtype.itemsize)
           + bt * _PER_ELEM_VMEM_BYTES)
    vmem_limit = int(min(max(est * 5 // 4, 32 << 20), 64 << 20))

    out = pl.pallas_call(
        _dca_kernel,
        out_shape=jax.ShapeDtypeStruct((b_pad, h), jnp.float32),
        grid_spec=pltpu.PrefetchScalarGridSpec(
            num_scalar_prefetch=0,
            grid=grid,
            in_specs=[
                pl.BlockSpec((bt, h), lambda i: (i, 0)),          # trg
                pl.BlockSpec((bt * l, h), lambda i: (i, 0)),      # enc_src as [B*L, H]
                pl.BlockSpec((bt, l), lambda i: (i, 0)),          # 2D additive mask
                pl.BlockSpec(W_SLAB_SHAPE, lambda i: (0, 0)),     # weights VMEM-resident
                pl.BlockSpec(B_SLAB_SHAPE, lambda i: (0, 0)),     # biases VMEM-resident
            ],
            out_specs=pl.BlockSpec((bt, h), lambda i: (i, 0)),
        ),
        compiler_params=pltpu.CompilerParams(
            dimension_semantics=("parallel",),        # batch axis shards across v7x's 2 TCs
            vmem_limit_bytes=vmem_limit),
    )(trg_in, enc2, mask_bias, w_slab, b_slab)
    return out[:b]


# --------------------------------------------------------------------------
# Pure-JAX reference (mirrors the PyTorch code path directly, unfused)
# --------------------------------------------------------------------------
def reference(trg, enc_src, trg_mask, src_mask, params):
    (e_wq, e_bq, e_wk, e_bk, e_wv, e_bv, e_wo, e_bo,
     s_wq, s_bq, s_wk, s_bk, s_wv, s_bv, s_wo, s_bo,
     fc_w, fc_b, ln_g, ln_b, ff_w1, ff_b1, ff_w2, ff_b2) = params

    def mha(query, key, value, mask4, wq, bq, wk, bk, wv, bv, wo, bo):
        bsz = query.shape[0]
        Q = (query @ wq + bq).reshape(bsz, -1, N_HEADS, HEAD_DIM).transpose(0, 2, 1, 3)
        K = (key @ wk + bk).reshape(bsz, -1, N_HEADS, HEAD_DIM).transpose(0, 2, 1, 3)
        V = (value @ wv + bv).reshape(bsz, -1, N_HEADS, HEAD_DIM).transpose(0, 2, 1, 3)
        energy = jnp.matmul(Q, K.transpose(0, 1, 3, 2)) / SCALE
        energy = jnp.where(mask4 == 0, NEG_BIAS, energy)
        attn = jax.nn.softmax(energy, axis=-1)
        x = jnp.matmul(attn, V).transpose(0, 2, 1, 3).reshape(bsz, -1, HID_DIM)
        return x @ wo + bo

    src_m4 = src_mask[:, None, None, :]
    trg_m4 = trg_mask[:, None, None, :]
    _trg_enc = mha(trg, enc_src, enc_src, src_m4,
                   e_wq, e_bq, e_wk, e_bk, e_wv, e_bv, e_wo, e_bo)   # [B,1,H]
    _trg_dec = mha(trg, trg, trg, trg_m4,
                   s_wq, s_bq, s_wk, s_bk, s_wv, s_bv, s_wo, s_bo)   # [B,1,H]
    _t = jnp.concatenate([_trg_enc, _trg_dec], axis=2)               # [B,1,2H]
    _t = jax.nn.relu(_t @ fc_w + fc_b)
    _t = jnp.squeeze(_t, axis=1)                                     # [B,H]
    y1 = _layer_norm(trg + _t, ln_g, ln_b)
    ff = jax.nn.relu(y1 @ ff_w1 + ff_b1) @ ff_w2 + ff_b2
    return _layer_norm(y1 + ff, ln_g, ln_b)


# --------------------------------------------------------------------------
# Parameter / input construction (mirrors the torch module's state dict)
# --------------------------------------------------------------------------
def _linear(key, fan_in, fan_out):
    kw, kb = jax.random.split(key)
    bound = 1.0 / np.sqrt(fan_in)
    w = jax.random.uniform(kw, (fan_in, fan_out), jnp.float32, -bound, bound)
    b = jax.random.uniform(kb, (1, fan_out), jnp.float32, -bound, bound)
    return w, b


def make_params(key):
    keys = jax.random.split(key, 12)
    e_wq, e_bq = _linear(keys[0], HID_DIM, HID_DIM)
    e_wk, e_bk = _linear(keys[1], HID_DIM, HID_DIM)
    e_wv, e_bv = _linear(keys[2], HID_DIM, HID_DIM)
    e_wo, e_bo = _linear(keys[3], HID_DIM, HID_DIM)
    s_wq, s_bq = _linear(keys[4], HID_DIM, HID_DIM)
    s_wk, s_bk = _linear(keys[5], HID_DIM, HID_DIM)
    s_wv, s_bv = _linear(keys[6], HID_DIM, HID_DIM)
    s_wo, s_bo = _linear(keys[7], HID_DIM, HID_DIM)
    fc_w, fc_b = _linear(keys[8], 2 * HID_DIM, HID_DIM)
    ln_g = jnp.ones((1, HID_DIM), jnp.float32)
    ln_b = jnp.zeros((1, HID_DIM), jnp.float32)
    ff_w1, ff_b1 = _linear(keys[9], HID_DIM, PF_DIM)
    ff_w2, ff_b2 = _linear(keys[10], PF_DIM, HID_DIM)
    return (e_wq, e_bq, e_wk, e_bk, e_wv, e_bv, e_wo, e_bo,
            s_wq, s_bq, s_wk, s_bk, s_wv, s_bv, s_wo, s_bo,
            fc_w, fc_b, ln_g, ln_b, ff_w1, ff_b1, ff_w2, ff_b2)


if __name__ == "__main__":
    key = jax.random.PRNGKey(0)
    k_trg, k_enc, k_params = jax.random.split(key, 3)

    trg = jax.random.normal(k_trg, (B, HID_DIM), jnp.float32)               # [2, 32]
    enc_src = jax.random.normal(k_enc, (B, L_SRC, HID_DIM), jnp.float32)    # [2, 8, 32]

    # masks: 1.0 = keep, 0.0 = masked out
    src_mask = jnp.ones((B, L_SRC), jnp.float32).at[1, -3:].set(0.0)        # [2, 8]
    trg_mask = jnp.ones((B, 1), jnp.float32)                                # [2, 1]

    params = make_params(k_params)

    out = drug_cell_attention(trg, enc_src, trg_mask, src_mask, params)
    out = jax.block_until_ready(out)

    ref = reference(trg, enc_src, trg_mask, src_mask, params)
    # host-side weight folding reorders float sums and the softmax denominator
    # uses the EUP approximate reciprocal (~2^-12 relative) -> loose tolerance.
    np.testing.assert_allclose(np.asarray(out), np.asarray(ref), rtol=2e-3, atol=2e-3)

    # bf16 enc_src / weight-slab path (halves HBM traffic); accumulation stays f32.
    out_bf16 = drug_cell_attention(trg, enc_src, trg_mask, src_mask, params,
                                   compute_dtype=jnp.bfloat16)
    out_bf16 = jax.block_until_ready(out_bf16)
    np.testing.assert_allclose(np.asarray(out_bf16), np.asarray(ref), rtol=5e-2, atol=5e-2)

    print("KERNEL_OK")
</pallas_src>

<mosaic_0001>
module attributes {stable_mosaic.version = 11 : i64} {
  func.func @_dca_kernel(%arg0: i32, %arg1: memref<2x32xf32, #tpu.memory_space<vmem>>, %arg2: memref<16x32xf32, #tpu.memory_space<vmem>>, %arg3: memref<2x8xf32, #tpu.memory_space<vmem>>, %arg4: memref<64x1152xf32, #tpu.memory_space<vmem>>, %arg5: memref<16x128xf32, #tpu.memory_space<vmem>>, %arg6: memref<2x32xf32, #tpu.memory_space<vmem>>) attributes {dimension_semantics = [#tpu.dimension_semantics<parallel>], iteration_bounds = array<i64: 1>, scalar_prefetch = 0 : i64, scratch_operands = 0 : i64, tpu.core_type = #tpu.core_type<tc>, window_params = [{transform_indices = @transform_0, window_bounds = array<i64: 2, 32>}, {transform_indices = @transform_1, window_bounds = array<i64: 16, 32>}, {transform_indices = @transform_2, window_bounds = array<i64: 2, 8>}, {pipeline_mode = #tpu.pipeline_mode<synchronous>, transform_indices = @transform_3, window_bounds = array<i64: 64, 1152>}, {pipeline_mode = #tpu.pipeline_mode<synchronous>, transform_indices = @transform_4, window_bounds = array<i64: 16, 128>}, {transform_indices = @transform_5, window_bounds = array<i64: 2, 32>}]} {
    %c0 = arith.constant 0 : index
    %c0_0 = arith.constant 0 : index
    %0 = vector.load %arg1[%c0, %c0_0] : memref<2x32xf32, #tpu.memory_space<vmem>>, vector<2x32xf32>
    %c0_1 = arith.constant 0 : index
    %c0_2 = arith.constant 0 : index
    %1 = vector.load %arg2[%c0_1, %c0_2] : memref<16x32xf32, #tpu.memory_space<vmem>>, vector<16x32xf32>
    %c0_3 = arith.constant 0 : index
    %c0_4 = arith.constant 0 : index
    %2 = vector.load %arg3[%c0_3, %c0_4] : memref<2x8xf32, #tpu.memory_space<vmem>>, vector<2x8xf32>
    %c0_5 = arith.constant 0 : index
    %c0_6 = arith.constant 0 : index
    %3 = vector.load %arg4[%c0_5, %c0_6] : memref<64x1152xf32, #tpu.memory_space<vmem>>, vector<32x32xf32>
    %c0_7 = arith.constant 0 : index
    %c128 = arith.constant 128 : index
    %4 = vector.load %arg4[%c0_7, %c128] : memref<64x1152xf32, #tpu.memory_space<vmem>>, vector<32x32xf32>
    %c0_8 = arith.constant 0 : index
    %c256 = arith.constant 256 : index
    %5 = vector.load %arg4[%c0_8, %c256] : memref<64x1152xf32, #tpu.memory_space<vmem>>, vector<32x32xf32>
    %c0_9 = arith.constant 0 : index
    %c384 = arith.constant 384 : index
    %6 = vector.load %arg4[%c0_9, %c384] : memref<64x1152xf32, #tpu.memory_space<vmem>>, vector<32x32xf32>
    %c0_10 = arith.constant 0 : index
    %c512 = arith.constant 512 : index
    %7 = vector.load %arg4[%c0_10, %c512] : memref<64x1152xf32, #tpu.memory_space<vmem>>, vector<32x32xf32>
    %c0_11 = arith.constant 0 : index
    %c640 = arith.constant 640 : index
    %8 = vector.load %arg4[%c0_11, %c640] : memref<64x1152xf32, #tpu.memory_space<vmem>>, vector<32x64xf32>
    %c0_12 = arith.constant 0 : index
    %c768 = arith.constant 768 : index
    %9 = vector.load %arg4[%c0_12, %c768] : memref<64x1152xf32, #tpu.memory_space<vmem>>, vector<64x32xf32>
    %c0_13 = arith.constant 0 : index
    %c896 = arith.constant 896 : index
    %10 = vector.load %arg4[%c0_13, %c896] : memref<64x1152xf32, #tpu.memory_space<vmem>>, vector<32x8xf32>
    %c0_14 = arith.constant 0 : index
    %c1024 = arith.constant 1024 : index
    %11 = vector.load %arg4[%c0_14, %c1024] : memref<64x1152xf32, #tpu.memory_space<vmem>>, vector<8x32xf32>
    %c0_15 = arith.constant 0 : index
    %c0_16 = arith.constant 0 : index
    %12 = vector.load %arg5[%c0_15, %c0_16] : memref<16x128xf32, #tpu.memory_space<vmem>>, vector<1x32xf32>
    %c1 = arith.constant 1 : index
    %c0_17 = arith.constant 0 : index
    %13 = vector.load %arg5[%c1, %c0_17] : memref<16x128xf32, #tpu.memory_space<vmem>>, vector<1x32xf32>
    %c2 = arith.constant 2 : index
    %c0_18 = arith.constant 0 : index
    %14 = vector.load %arg5[%c2, %c0_18] : memref<16x128xf32, #tpu.memory_space<vmem>>, vector<1x32xf32>
    %c3 = arith.constant 3 : index
    %c0_19 = arith.constant 0 : index
    %15 = vector.load %arg5[%c3, %c0_19] : memref<16x128xf32, #tpu.memory_space<vmem>>, vector<1x32xf32>
    %c4 = arith.constant 4 : index
    %c0_20 = arith.constant 0 : index
    %16 = vector.load %arg5[%c4, %c0_20] : memref<16x128xf32, #tpu.memory_space<vmem>>, vector<1x32xf32>
    %c5 = arith.constant 5 : index
    %c0_21 = arith.constant 0 : index
    %17 = vector.load %arg5[%c5, %c0_21] : memref<16x128xf32, #tpu.memory_space<vmem>>, vector<1x64xf32>
    %c6 = arith.constant 6 : index
    %c0_22 = arith.constant 0 : index
    %18 = vector.load %arg5[%c6, %c0_22] : memref<16x128xf32, #tpu.memory_space<vmem>>, vector<1x32xf32>
    %c7 = arith.constant 7 : index
    %c0_23 = arith.constant 0 : index
    %19 = vector.load %arg5[%c7, %c0_23] : memref<16x128xf32, #tpu.memory_space<vmem>>, vector<1x32xf32>
    %c8 = arith.constant 8 : index
    %c0_24 = arith.constant 0 : index
    %20 = vector.load %arg5[%c8, %c0_24] : memref<16x128xf32, #tpu.memory_space<vmem>>, vector<1x32xf32>
    %cst = arith.constant dense<0.000000e+00> : vector<2x32xf32>
    %21 = tpu.matmul %0, %3, %cst {dimension_numbers = #tpu.dot_dimension_numbers<[1], [0], [0], [1], [0, 0, 1, 1], [], []>} : vector<2x32xf32>, vector<32x32xf32>, vector<2x32xf32> -> vector<2x32xf32>
    %22 = vector.broadcast %12 : vector<1x32xf32> to vector<2x32xf32>
    %23 = arith.addf %21, %22 : vector<2x32xf32>
    %cst_25 = arith.constant dense<0.000000e+00> : vector<2x32xf32>
    %24 = tpu.matmul %0, %4, %cst_25 {dimension_numbers = #tpu.dot_dimension_numbers<[1], [0], [0], [1], [0, 0, 1, 1], [], []>} : vector<2x32xf32>, vector<32x32xf32>, vector<2x32xf32> -> vector<2x32xf32>
    %25 = vector.broadcast %13 : vector<1x32xf32> to vector<2x32xf32>
    %26 = arith.addf %24, %25 : vector<2x32xf32>
    %cst_26 = arith.constant dense<0.000000e+00> : vector<16x32xf32>
    %27 = tpu.matmul %1, %5, %cst_26 {dimension_numbers = #tpu.dot_dimension_numbers<[1], [0], [0], [1], [0, 0, 1, 1], [], []>} : vector<16x32xf32>, vector<32x32xf32>, vector<16x32xf32> -> vector<16x32xf32>
    %28 = vector.broadcast %14 : vector<1x32xf32> to vector<16x32xf32>
    %29 = arith.addf %27, %28 : vector<16x32xf32>
    %cst_27 = arith.constant dense<0.000000e+00> : vector<16x32xf32>
    %30 = tpu.matmul %1, %6, %cst_27 {dimension_numbers = #tpu.dot_dimension_numbers<[1], [0], [0], [1], [0, 0, 1, 1], [], []>} : vector<16x32xf32>, vector<32x32xf32>, vector<16x32xf32> -> vector<16x32xf32>
    %31 = vector.broadcast %15 : vector<1x32xf32> to vector<16x32xf32>
    %32 = arith.addf %30, %31 : vector<16x32xf32>
    %33 = vector.shape_cast %29 : vector<16x32xf32> to vector<2x8x32xf32>
    %34 = vector.shape_cast %32 : vector<16x32xf32> to vector<2x8x32xf32>
    %35 = vector.shape_cast %23 : vector<2x32xf32> to vector<2x1x32xf32>
    %36 = vector.broadcast %35 : vector<2x1x32xf32> to vector<2x8x32xf32>
    %37 = arith.mulf %36, %33 : vector<2x8x32xf32>
    %38 = vector.shape_cast %37 : vector<2x8x32xf32> to vector<16x32xf32>
    %cst_28 = arith.constant dense<0.000000e+00> : vector<16x8xf32>
    %39 = tpu.matmul %38, %10, %cst_28 {dimension_numbers = #tpu.dot_dimension_numbers<[1], [0], [0], [1], [0, 0, 1, 1], [], []>} : vector<16x32xf32>, vector<32x8xf32>, vector<16x8xf32> -> vector<16x8xf32>
    %40 = vector.shape_cast %39 : vector<16x8xf32> to vector<2x8x8xf32>
    %cst_29 = arith.constant 0.353553385 : f32
    %41 = vector.broadcast %cst_29 : f32 to vector<2x8x8xf32>
    %42 = arith.mulf %40, %41 : vector<2x8x8xf32>
    %43 = vector.shape_cast %2 : vector<2x8xf32> to vector<2x8x1xf32>
    %44 = vector.broadcast %43 : vector<2x8x1xf32> to vector<2x8x8xf32>
    %45 = arith.addf %42, %44 : vector<2x8x8xf32>
    %cst_30 = arith.constant dense<0xFF800000> : vector<2x8xf32>
    %46 = vector.multi_reduction <maximumf>, %45, %cst_30 [1] : vector<2x8x8xf32> to vector<2x8xf32>
    %47 = vector.shape_cast %46 : vector<2x8xf32> to vector<2x1x8xf32>
    %48 = vector.broadcast %47 : vector<2x1x8xf32> to vector<2x8x8xf32>
    %49 = arith.subf %45, %48 : vector<2x8x8xf32>
    %50 = math.exp %49 : vector<2x8x8xf32>
    %cst_31 = arith.constant dense<0.000000e+00> : vector<2x8xf32>
    %51 = vector.multi_reduction <add>, %50, %cst_31 [1] : vector<2x8x8xf32> to vector<2x8xf32>
    %52 = vector.shape_cast %51 : vector<2x8xf32> to vector<2x1x8xf32>
    %53 = tpu.reciprocal %52 {approx = true} : vector<2x1x8xf32> -> vector<2x1x8xf32>
    %54 = vector.broadcast %53 : vector<2x1x8xf32> to vector<2x8x8xf32>
    %55 = arith.mulf %50, %54 : vector<2x8x8xf32>
    %56 = vector.shape_cast %55 : vector<2x8x8xf32> to vector<16x8xf32>
    %cst_32 = arith.constant dense<0.000000e+00> : vector<16x32xf32>
    %57 = tpu.matmul %56, %11, %cst_32 {dimension_numbers = #tpu.dot_dimension_numbers<[1], [0], [0], [1], [0, 0, 1, 1], [], []>} : vector<16x8xf32>, vector<8x32xf32>, vector<16x32xf32> -> vector<16x32xf32>
    %58 = vector.shape_cast %57 : vector<16x32xf32> to vector<2x8x32xf32>
    %59 = arith.mulf %58, %34 : vector<2x8x32xf32>
    %cst_33 = arith.constant dense<0.000000e+00> : vector<2x32xf32>
    %60 = vector.multi_reduction <add>, %59, %cst_33 [1] : vector<2x8x32xf32> to vector<2x32xf32>
    %cst_34 = arith.constant dense<0.000000e+00> : vector<2x32xf32>
    %61 = tpu.matmul %60, %7, %cst_34 {dimension_numbers = #tpu.dot_dimension_numbers<[1], [0], [0], [1], [0, 0, 1, 1], [], []>} : vector<2x32xf32>, vector<32x32xf32>, vector<2x32xf32> -> vector<2x32xf32>
    %62 = arith.addf %61, %26 : vector<2x32xf32>
    %63 = vector.broadcast %16 : vector<1x32xf32> to vector<2x32xf32>
    %64 = arith.addf %62, %63 : vector<2x32xf32>
    %cst_35 = arith.constant 0.000000e+00 : f32
    %65 = vector.broadcast %cst_35 : f32 to vector<2x32xf32>
    %66 = arith.maximumf %64, %65 : vector<2x32xf32>
    %67 = arith.addf %0, %66 : vector<2x32xf32>
    %cst_36 = arith.constant dense<0.000000e+00> : vector<2xf32>
    %68 = vector.multi_reduction <add>, %67, %cst_36 [1] : vector<2x32xf32> to vector<2xf32>
    %69 = vector.shape_cast %68 : vector<2xf32> to vector<2x1xf32>
    %cst_37 = arith.constant 3.200000e+01 : f32
    %70 = vector.broadcast %cst_37 : f32 to vector<2x1xf32>
    %71 = arith.divf %69, %70 : vector<2x1xf32>
    %72 = vector.broadcast %71 : vector<2x1xf32> to vector<2x32xf32>
    %73 = arith.subf %67, %72 : vector<2x32xf32>
    %74 = arith.mulf %73, %73 : vector<2x32xf32>
    %cst_38 = arith.constant dense<0.000000e+00> : vector<2xf32>
    %75 = vector.multi_reduction <add>, %74, %cst_38 [1] : vector<2x32xf32> to vector<2xf32>
    %76 = vector.shape_cast %75 : vector<2xf32> to vector<2x1xf32>
    %cst_39 = arith.constant 3.200000e+01 : f32
    %77 = vector.broadcast %cst_39 : f32 to vector<2x1xf32>
    %78 = arith.divf %76, %77 : vector<2x1xf32>
    %79 = vector.broadcast %71 : vector<2x1xf32> to vector<2x32xf32>
    %80 = arith.subf %67, %79 : vector<2x32xf32>
    %cst_40 = arith.constant 9.99999974E-6 : f32
    %81 = vector.broadcast %cst_40 : f32 to vector<2x1xf32>
    %82 = arith.addf %78, %81 : vector<2x1xf32>
    %83 = math.rsqrt %82 : vector<2x1xf32>
    %84 = vector.broadcast %83 : vector<2x1xf32> to vector<2x32xf32>
    %85 = arith.mulf %80, %84 : vector<2x32xf32>
    %86 = vector.broadcast %19 : vector<1x32xf32> to vector<2x32xf32>
    %87 = arith.mulf %85, %86 : vector<2x32xf32>
    %88 = vector.broadcast %20 : vector<1x32xf32> to vector<2x32xf32>
    %89 = arith.addf %87, %88 : vector<2x32xf32>
    %cst_41 = arith.constant dense<0.000000e+00> : vector<2x64xf32>
    %90 = tpu.matmul %89, %8, %cst_41 {dimension_numbers = #tpu.dot_dimension_numbers<[1], [0], [0], [1], [0, 0, 1, 1], [], []>} : vector<2x32xf32>, vector<32x64xf32>, vector<2x64xf32> -> vector<2x64xf32>
    %91 = vector.broadcast %17 : vector<1x64xf32> to vector<2x64xf32>
    %92 = arith.addf %90, %91 : vector<2x64xf32>
    %cst_42 = arith.constant 0.000000e+00 : f32
    %93 = vector.broadcast %cst_42 : f32 to vector<2x64xf32>
    %94 = arith.maximumf %92, %93 : vector<2x64xf32>
    %cst_43 = arith.constant dense<0.000000e+00> : vector<2x32xf32>
    %95 = tpu.matmul %94, %9, %cst_43 {dimension_numbers = #tpu.dot_dimension_numbers<[1], [0], [0], [1], [0, 0, 1, 1], [], []>} : vector<2x64xf32>, vector<64x32xf32>, vector<2x32xf32> -> vector<2x32xf32>
    %96 = vector.broadcast %18 : vector<1x32xf32> to vector<2x32xf32>
    %97 = arith.addf %95, %96 : vector<2x32xf32>
    %98 = arith.addf %89, %97 : vector<2x32xf32>
    %cst_44 = arith.constant dense<0.000000e+00> : vector<2xf32>
    %99 = vector.multi_reduction <add>, %98, %cst_44 [1] : vector<2x32xf32> to vector<2xf32>
    %100 = vector.shape_cast %99 : vector<2xf32> to vector<2x1xf32>
    %cst_45 = arith.constant 3.200000e+01 : f32
    %101 = vector.broadcast %cst_45 : f32 to vector<2x1xf32>
    %102 = arith.divf %100, %101 : vector<2x1xf32>
    %103 = vector.broadcast %102 : vector<2x1xf32> to vector<2x32xf32>
    %104 = arith.subf %98, %103 : vector<2x32xf32>
    %105 = arith.mulf %104, %104 : vector<2x32xf32>
    %cst_46 = arith.constant dense<0.000000e+00> : vector<2xf32>
    %106 = vector.multi_reduction <add>, %105, %cst_46 [1] : vector<2x32xf32> to vector<2xf32>
    %107 = vector.shape_cast %106 : vector<2xf32> to vector<2x1xf32>
    %cst_47 = arith.constant 3.200000e+01 : f32
    %108 = vector.broadcast %cst_47 : f32 to vector<2x1xf32>
    %109 = arith.divf %107, %108 : vector<2x1xf32>
    %110 = vector.broadcast %102 : vector<2x1xf32> to vector<2x32xf32>
    %111 = arith.subf %98, %110 : vector<2x32xf32>
    %cst_48 = arith.constant 9.99999974E-6 : f32
    %112 = vector.broadcast %cst_48 : f32 to vector<2x1xf32>
    %113 = arith.addf %109, %112 : vector<2x1xf32>
    %114 = math.rsqrt %113 : vector<2x1xf32>
    %115 = vector.broadcast %114 : vector<2x1xf32> to vector<2x32xf32>
    %116 = arith.mulf %111, %115 : vector<2x32xf32>
    %117 = vector.broadcast %19 : vector<1x32xf32> to vector<2x32xf32>
    %118 = arith.mulf %116, %117 : vector<2x32xf32>
    %119 = vector.broadcast %20 : vector<1x32xf32> to vector<2x32xf32>
    %120 = arith.addf %118, %119 : vector<2x32xf32>
    %c0_49 = arith.constant 0 : index
    %c0_50 = arith.constant 0 : index
    %121 = vector.load %arg6[%c0_49, %c0_50] : memref<2x32xf32, #tpu.memory_space<vmem>>, vector<2x32xf32>
    tpu.vector_store %arg6[%c0_49, %c0_50], %120 {strides = array<i32>} : memref<2x32xf32, #tpu.memory_space<vmem>>, vector<2x32xf32>,
    return
  }
  func.func @transform_0(%arg0: i32) -> (i32, i32) {
    %c0_i32 = arith.constant 0 : i32
    %c0_i32_0 = arith.constant 0 : i32
    return %arg0, %c0_i32 : i32, i32
  }
  func.func @transform_1(%arg0: i32) -> (i32, i32) {
    %c0_i32 = arith.constant 0 : i32
    %c0_i32_0 = arith.constant 0 : i32
    return %arg0, %c0_i32 : i32, i32
  }
  func.func @transform_2(%arg0: i32) -> (i32, i32) {
    %c0_i32 = arith.constant 0 : i32
    %c0_i32_0 = arith.constant 0 : i32
    return %arg0, %c0_i32 : i32, i32
  }
  func.func @transform_3(%arg0: i32) -> (i32, i32) {
    %c0_i32 = arith.constant 0 : i32
    %c0_i32_0 = arith.constant 0 : i32
    %c0_i32_1 = arith.constant 0 : i32
    return %c0_i32, %c0_i32_0 : i32, i32
  }
  func.func @transform_4(%arg0: i32) -> (i32, i32) {
    %c0_i32 = arith.constant 0 : i32
    %c0_i32_0 = arith.constant 0 : i32
    %c0_i32_1 = arith.constant 0 : i32
    return %c0_i32, %c0_i32_0 : i32, i32
  }
  func.func @transform_5(%arg0: i32) -> (i32, i32) {
    %c0_i32 = arith.constant 0 : i32
    %c0_i32_0 = arith.constant 0 : i32
    return %arg0, %c0_i32 : i32, i32
  }
}

</mosaic_0001>

<bundles_post_ra>
// kernel: tpu_custom_call.1
= control target key start
LH: loop header
LB: loop body
LE: loop exit
PB: predicated region body
PF: predicated region fallthrough
CT: control target
= control target key end

     0   :  { %10 = vsyncpa [#allocation3], 0  ;;  %s850_s0 = inlined_call_operand.hbm [shape: f32[2,32], index: 0, kind: input, shape index: {}]   ;;  %s851_s1 = inlined_call_operand.hbm [shape: f32[16,32], index: 1, kind: input, shape index: {}]   ;;  %s852_s2 = inlined_call_operand.hbm [shape: f32[2,8], index: 2, kind: input, shape index: {}]   ;;  %s853_s3 = inlined_call_operand.hbm [shape: f32[64,1152], index: 3, kind: input, shape index: {}]   ;;  %s854_s4 = inlined_call_operand.hbm [shape: f32[16,128], index: 4, kind: input, shape index: {}]   ;;  %s855_s5 = inlined_call_operand.hbm [shape: f32[2,32], index: 5, kind: output, shape index: {}]  }
   0x1   :  { %11 = vsyncpa [#allocation6], 0 }
   0x2   :  { %12 = vsyncpa [#allocation9], 0  ;;  %s29_s20 = sshll.u32 %s851_s1, 4  ;;  %s30_s20 = int_to_ptr.hbm [resolvable:$true] %s29_s20 }
   0x3   :  { %13 = vsyncpa [#allocation4], 0  ;;  %s743_s21 = smov [#allocation5]   ;;  %s53_s25 = sshll.u32 %s853_s3, 4  ;;  %s54_s25 = int_to_ptr.hbm [resolvable:$true] %s53_s25 }
   0x4   :  { %s31_s22 = sshll.u32 %s743_s21, 4  ;;  %s744_s26 = smov 128   ;;  %s32_s22 = int_to_ptr.vmem [resolvable:$true] %s31_s22 }
   0x5   :  { %s745_s27 = smov 8   ;;  %s746_s28 = smov [#allocation8]  }
   0x6   :  { %37 = dma.hbm_to_vmem [thread:$0]  %s30_s20, 256, %s32_s22, [#allocation6], %s744_s26, %s744_s26, %s745_s27  }
   0x7   :  { %s55_s29 = sshll.u32 %s746_s28, 4  ;;  %s747_s1 = smov 1152   ;;  %s56_s29 = int_to_ptr.vmem [resolvable:$true] %s55_s29 }
   0x8   :  { %s748_s30 = smov 72   ;;  %s19_s8 = sshll.u32 %s850_s0, 4  ;;  %s20_s8 = int_to_ptr.hbm [resolvable:$true] %s19_s8 }
   0x9   :  { %61 = dma.hbm_to_vmem [thread:$0]  %s54_s25, 9216, %s56_s29, [#allocation9], %s747_s1, %s747_s1, %s748_s30  }
   0xa   :  { %s749_s9 = smov [#allocation2]   ;;  %s43_s12 = sshll.u32 %s852_s2, 4  ;;  %s44_s12 = int_to_ptr.hbm [resolvable:$true] %s43_s12 }
   0xb   :  { %s21_s3 = sshll.u32 %s749_s9, 4  ;;  %s750_s13 = smov [#allocation7]   ;;  %s22_s3 = int_to_ptr.vmem [resolvable:$true] %s21_s3 }
   0xc   :  { %24 = dma.hbm_to_vmem [thread:$0]  %s20_s8, 32, %s22_s3, [#allocation3]  }
   0xd   :  { %s45_s14 = sshll.u32 %s750_s13, 4  ;;  %s66_s17 = sshll.u32 %s854_s4, 4  ;;  %s46_s14 = int_to_ptr.vmem [resolvable:$true] %s45_s14  ;;  %s67_s17 = int_to_ptr.hbm [resolvable:$true] %s66_s17 }
   0xe   :  { %48 = dma.hbm_to_vmem [thread:$0]  %s44_s12, 32, %s46_s14, [#allocation6]  }
   0xf   :  { %s751_s0 = smov [#allocation10]  }
  0x10   :  { %s68_s18 = sshll.u32 %s751_s0, 4  ;;  %s69_s18 = int_to_ptr.vmem [resolvable:$true] %s68_s18 }
  0x11   :  { %74 = dma.hbm_to_vmem [thread:$0]  %s67_s17, 256, %s69_s18, [#allocation9], %s744_s26, %s744_s26, %s745_s27  }
  0x12   :  { %735 = dma.done.wait [#allocation3], 32  }
  0x13   :  { %736 = vsyncadd [#allocation3], 4294967264 }
  0x14   :  { %737 = dma.done.wait [#allocation6], 288  }
  0x15   :  { %738 = vsyncadd [#allocation6], 4294967008 }
  0x16   :  { %739 = dma.done.wait [#allocation9], 9472  }
  0x17   :  { %740 = vsyncadd [#allocation9], 4294957824  ;;  %v110_v0 = vld [vmem:[#allocation8 + $0xe8] sm:$0xff]  ;;  %v109_v1 = vld [vmem:[#allocation8 + $0xa0] sm:$0xff]  ;;  %vm146_vm0 = vcmask 261120   ;;  %v285_v12 = vlaneseq  ;;  %vm300_vm1 = vcmask 64512  }
  0x18   :  { %v102_v2 = vld [vmem:[#allocation8 + $0xd8] sm:$0xff]  ;;  %210 = vmatpush.msra.mxu2 %v110_v0  ;;  %v101_v3 = vld [vmem:[#allocation8 + $0x90] sm:$0xff]  ;;  %v100_v6 = vld [vmem:[#allocation8 + $0x48] sm:$0xff]  ;;  %vm386_vm2 = vcmask 1041409   ;;  %vm414_vm3 = vcmask 254976   ;;  %vm474_vm8 = vcmask 523264  }
  0x19   :  { %162 = vmatpush.msra.mxu0 %v102_v2  ;;  %v108_v4 = vld [vmem:[#allocation8 + $0x58] sm:$0xff]  ;;  %v107_v5 = vld [vmem:[#allocation8 + $0x10] sm:$0xff]  ;;  %v99_v8 = vld [vmem:[#allocation8] sm:$0xff]  ;;  %v286_v14 = vshrl.u32 %v285_v12, 7  ;;  %s753_s2 = smov [#allocation11]   ;;  %s531_s21 = sshll.u32 %s855_s5, 4  ;;  %s532_s21 = int_to_ptr.hbm [resolvable:$true] %s531_s21 }
  0x1a   :  { %211 = vmatpush.msra.mxu2 %v109_v1  ;;  %v805_v7 = vld [vmem:[#allocation5] sm:$0xff]  ;;  %v807_v9 = vld [vmem:[#allocation2] sm:$0x3]  ;;  %v813_v11 = vld [vmem:[#allocation5 + $0x8] sm:$0xff]  ;;  %s529_s4 = sshll.u32 %s753_s2, 4  ;;  %s530_s4 = int_to_ptr.vmem [resolvable:$true] %s529_s4 }
  0x1b   :  { %163 = vmatpush.msra.mxu0 %v101_v3  ;;  %v134_v10 = vld [vmem:[#allocation8 + $0x110] sm:$0xff]  ;;  %v133_v13 = vld [vmem:[#allocation8 + $0xc8] sm:$0xff]  ;;  %v132_v15 = vld [vmem:[#allocation8 + $0x80] sm:$0xff]  ;;  %567 = vset.pattern.permute.xlu0 %v286_v14 }
  0x1c   :  { %212 = vmatpush.msra.mxu2 %v108_v4  ;;  %v131_v16 = vld [vmem:[#allocation8 + $0x38] sm:$0xff]  ;;  %v568_v20 = vld [vmem:[#allocation10] ss:$0 sm:$0xff]  ;;  %v569_v23 = vld [vmem:[#allocation10 + $0x2] ss:$0 sm:$0xff] }
  0x1d   :  { %164 = vmatpush.msra.mxu0 %v100_v6  ;;  %v98_v17 = vld [vmem:[#allocation7] sm:$0x3]  ;;  %v106_v37 = vld [vmem:[#allocation8 + $0xe0] sm:$0xff]  ;;  %v114_v38 = vld [vmem:[#allocation8 + $0xf0] sm:$0xff] }
  0x1e   :  { %213 = vmatpush.msra.mxu2 %v107_v5  ;;  %v284_v18 = vperm.slane %v98_v17, 0  ;;  %v291_v19 = vperm.slane %v98_v17, 1  ;;  %183 = vmatpush.msra.mxu1 %v106_v37  ;;  %v105_v40 = vld [vmem:[#allocation8 + $0x98] sm:$0xff]  ;;  %v113_v41 = vld [vmem:[#allocation8 + $0xa8] sm:$0xff]  ;;  %v104_v43 = vld [vmem:[#allocation8 + $0x50] sm:$0xff] }
  0x1f   :  { %165 = vmatpush.msra.mxu0 %v99_v8  ;;  %545 = vmatmul.msk.f32.vlgmr.msra.gmra.mxu2 %vm146_vm0, %v805_v7  ;;  %v112_v44 = vld [vmem:[#allocation8 + $0x60] sm:$0xff]  ;;  %v103_v47 = vld [vmem:[#allocation8 + $0x8] sm:$0xff]  ;;  %v111_v48 = vld [vmem:[#allocation8 + $0x18] sm:$0xff] }
  0x20   :  { %543 = vmatmul.msk.f32.vlgmr.msra.gmra.mxu0 %vm146_vm0, %v807_v9  ;;  %234 = vmatpush.msra.mxu3 %v114_v38  ;;  %v135_v50 = vld [vmem:[#allocation8 + $0x40] sm:$0xff] }
  0x21   :  { %271 = vmatpush.msrb.mxu0 %v134_v10  ;;  %184 = vmatpush.msra.mxu1 %v105_v40 }
  0x22   :  { %235 = vmatpush.msra.mxu3 %v113_v41 }
  0x23   :  { %272 = vmatpush.msrb.mxu0 %v133_v13  ;;  %289 = vperm.xlu0 %567, %v284_v18  }
  0x24   :  { %185 = vmatpush.msra.mxu1 %v104_v43  ;;  %236 = vmatpush.msra.mxu3 %v112_v44 }
  0x25   :  { %273 = vmatpush.msrb.mxu0 %v132_v15 }
  0x26   :  { %186 = vmatpush.msra.mxu1 %v103_v47  ;;  %237 = vmatpush.msra.mxu3 %v111_v48 }
  0x27   :  { %546 = vmatmul.msk.f32.gmra.mxu2 %vm146_vm0, %v813_v11  ;;  %274 = vmatpush.msrb.mxu0 %v131_v16 }
  0x28   :  { %544 = vmatmul.msk.f32.vlgmr.msra.gmra.mxu1 %vm146_vm0, %v807_v9  ;;  %547 = vmatmul.msk.f32.vlgmr.msra.gmra.mxu3 %vm146_vm0, %v805_v7 }
  0x29   :  { %360 = vmatpush.msrb.mxu1 %v135_v50 }
  0x2b   :  { %296 = vperm.xlu0 %567, %v291_v19  }
  0x30   :  { %548 = vmatmul.msk.f32.gmra.mxu3 %vm146_vm0, %v813_v11 }
  0x95   :  { %v290_v33 = vpop.permute.xlu0 %289 }
  0x9d   :  { %v167_v21 = vpop.f32.mrf.mxu0  ;;  %v297_v52 = vpop.permute.xlu0 %296 }
  0x9e   :  { %v168_v22 = vadd.f32 %v568_v20, %v167_v21 }
  0xa0   :  { %v247_v24 = vperm.slane %v168_v22, 0  ;;  %v246_v28 = vrot.slane %v168_v22, 1 }
  0xa2   :  { %v215_v25 = vpop.f32.mrf.mxu2  ;;  %v248_v30 = vperm.slane %v246_v28, 0 }
  0xa3   :  { %v216_v26 = vadd.f32 %v569_v23, %v215_v25  ;;  %v118_v25 = vld [vmem:[#allocation8 + $0xf8] sm:$0xff] }
  0xa4   :  { %402 = vmatpush.msrb.mxu2 %v118_v25 }
  0xa5   :  { %v251_v27 = vmul.f32 %v247_v24, %v216_v26  ;;  %v117_v26 = vld [vmem:[#allocation8 + $0xb0] sm:$0xff]  ;;  %v188_v28 = vpop.f32.mrf.mxu1 }
  0xa6   :  { %403 = vmatpush.msrb.mxu2 %v117_v26 }
  0xa7   :  { %549 = vmatmul.msk.f32.vlgmr.msrb.gmra.mxu0 %vm146_vm0, %v251_v27  ;;  %v116_v27 = vld [vmem:[#allocation8 + $0x68] sm:$0xff] }
  0xa8   :  { %404 = vmatpush.msrb.mxu2 %v116_v27 }
  0xaa   :  { %v218_v29 = vpop.f32.mrf.mxu2 }
  0xab   :  { %v219_v31 = vadd.f32 %v569_v23, %v218_v29  ;;  %v115_v29 = vld [vmem:[#allocation8 + $0x20] sm:$0xff] }
  0xac   :  { %405 = vmatpush.msrb.mxu2 %v115_v29 }
  0xad   :  { %v252_v32 = vmul.f32 %v248_v30, %v219_v31  ;;  %v239_v30 = vpop.f32.mrf.mxu3  ;;  %v571_v31 = vld [vmem:[#allocation10 + $0x3] ss:$0 sm:$0xff] }
  0xaf   :  { %550 = vmatmul.msk.f32.gmra.mxu0 %vm146_vm0, %v252_v32  ;;  %v240_v32 = vadd.f32 %v571_v31, %v239_v30  ;;  %v573_v30 = vld [vmem:[#allocation10 + $0x7] ss:$0 sm:$0xff] }
 0x124   :  { %v276_v34 = vpop.f32.mrf.mxu0 }
 0x125   :  { %v282_v35 = vmul.f32 0.35355338, %v276_v34 }
 0x127   :  { %v298_v36 = vadd.f32 %v290_v33, %v282_v35  ;;  %v242_v35 = vpop.f32.mrf.mxu3 }
 0x128   :  { %v243_v38 = vadd.f32 %v571_v31, %v242_v35 }
 0x129   :  { %v301_v39 = vsel %vm300_vm1, %v298_v36, -inf }
 0x12a   :  { %v302_v42 = vrot.slane %v301_v39, 4 }
 0x12c   :  { %v303_v45 = vmax.f32 %v301_v39, %v302_v42  ;;  %v279_v46 = vpop.f32.mrf.mxu0 }
 0x12d   :  { %v283_v49 = vmul.f32 0.35355338, %v279_v46 }
 0x12e   :  { %v304_v51 = vrot.slane %v303_v45, 2 }
 0x12f   :  { %v299_v53 = vadd.f32 %v297_v52, %v283_v49 }
 0x130   :  { %v305_v54 = vmax.f32 %v303_v45, %v304_v51 }
 0x131   :  { %v308_v55 = vsel %vm300_vm1, %v299_v53, -inf }
 0x132   :  { %v306_v56 = vrot.slane %v305_v54, 1  ;;  %v309_v57 = vrot.slane %v308_v55, 4 }
 0x134   :  { %v307_v58 = vmax.f32 %v305_v54, %v306_v56  ;;  %v310_v59 = vmax.f32 %v308_v55, %v309_v57  ;;  %v570_v54 = vld [vmem:[#allocation10 + $0x1] ss:$0 sm:$0xff]  ;;  %v572_v56 = vld [vmem:[#allocation10 + $0x4] ss:$0 sm:$0xff] }
 0x135   :  { %v189_v55 = vadd.f32 %v570_v54, %v188_v28 }
 0x136   :  { %v315_v60 = vsub.f32 %v298_v36, %v307_v58  ;;  %v311_v61 = vrot.slane %v310_v59, 2 }
 0x138   :  { %v317_v62 = vmul.f32 1.442695, %v315_v60  ;;  %v312_v63 = vmax.f32 %v310_v59, %v311_v61 }
 0x13a   :  { %577 = vpow2.f32 %v317_v62  ;;  %v313_v0 = vrot.slane %v312_v63, 1 }
 0x13c   :  { %v314_v1 = vmax.f32 %v312_v63, %v313_v0  ;;  %v752_v63 = vmov 32.0  }
 0x13e   :  { %v316_v2 = vsub.f32 %v299_v53, %v314_v1 }
 0x140   :  { %v578_v3 = vpop.eup %577  ;;  %v319_v4 = vmul.f32 1.442695, %v316_v2 }
 0x141   :  { %v321_v5 = vsel %vm300_vm1, %v578_v3, 0.0 }
 0x142   :  { %v322_v6 = vrot.slane %v321_v5, 4  ;;  %579 = vpow2.f32 %v319_v4 }
 0x144   :  { %v323_v7 = vadd.f32 %v322_v6, %v321_v5 }
 0x146   :  { %v324_v8 = vrot.slane %v323_v7, 2 }
 0x148   :  { %v580_v10 = vpop.eup %579  ;;  %v325_v12 = vadd.f32 %v324_v8, %v323_v7 }
 0x149   :  { %v328_v13 = vsel %vm300_vm1, %v580_v10, 0.0 }
 0x14a   :  { %v329_v14 = vrot.slane %v328_v13, 4  ;;  %v326_v11 = vrot.slane %v325_v12, 1 }
 0x14c   :  { %v330_v15 = vadd.f32 %v329_v14, %v328_v13  ;;  %v327_v16 = vadd.f32 %v326_v11, %v325_v12  ;;  %v122_v12 = vld [vmem:[#allocation8 + $0x100] sm:$0xff]  ;;  %v121_v13 = vld [vmem:[#allocation8 + $0xb8] sm:$0xff]  ;;  %v120_v14 = vld [vmem:[#allocation8 + $0x70] sm:$0xff] }
 0x14d   :  { %464 = vmatpush.msrb.mxu3 %v122_v12  ;;  %v119_v11 = vld [vmem:[#allocation8 + $0x28] sm:$0xff] }
 0x14e   :  { %581 = vrcp.f32 %v327_v16  ;;  %v331_v17 = vrot.slane %v330_v15, 2  ;;  %v129_v16 = vld [vmem:[#allocation8 + $0x1e0] sm:$0xff] }
 0x14f   :  { %465 = vmatpush.msrb.mxu3 %v121_v13 }
 0x150   :  { %v332_v18 = vadd.f32 %v331_v17, %v330_v15  ;;  %v130_v15 = vld [vmem:[#allocation8 + $0x228] sm:$0xff]  ;;  %v128_v17 = vld [vmem:[#allocation8 + $0x198] sm:$0xff] }
 0x151   :  { %466 = vmatpush.msrb.mxu3 %v120_v14  ;;  %486 = vmatpush.msra.mxu0 %v130_v15 }
 0x152   :  { %v333_v19 = vrot.slane %v332_v18, 1 }
 0x153   :  { %467 = vmatpush.msrb.mxu3 %v119_v11  ;;  %487 = vmatpush.msra.mxu0 %v129_v16 }
 0x154   :  { %v582_v20 = vpop.eup %581  ;;  %v334_v21 = vadd.f32 %v333_v19, %v332_v18 }
 0x155   :  { %v337_v22 = vmul.f32 %v582_v20, %v578_v3  ;;  %v127_v20 = vld [vmem:[#allocation8 + $0x150] sm:$0xff]  ;;  %488 = vmatpush.msra.mxu0 %v128_v17 }
 0x156   :  { %583 = vrcp.f32 %v334_v21 }
 0x157   :  { %551 = vmatmul.msk.f32.vlgmr.msrb.gmra.mxu1 %vm300_vm1, %v337_v22  ;;  %585 = vrcp.f32 %v752_v63  ;;  %v126_v22 = vld [vmem:[#allocation8 + $0x108] sm:$0xff]  ;;  %489 = vmatpush.msra.mxu0 %v127_v20 }
 0x159   :  { %490 = vmatpush.msra.mxu0 %v126_v22 }
 0x15c   :  { %v584_v23 = vpop.eup %583 }
 0x15d   :  { %v338_v24 = vmul.f32 %v584_v23, %v580_v10  ;;  %v586_v0 = vpop.eup %585  ;;  %v125_v23 = vld [vmem:[#allocation8 + $0xc0] sm:$0xff] }
 0x15e   :  { %v419_v1 = vmul.f32 32.0, %v586_v0  ;;  %vm423_vm4 = vweird.f32 %v586_v0  ;;  %491 = vmatpush.msra.mxu0 %v125_v23 }
 0x15f   :  { %552 = vmatmul.msk.f32.gmra.mxu1 %vm300_vm1, %v338_v24 }
 0x160   :  { %v420_v2 = vsub.f32 1.0, %v419_v1 }
 0x162   :  { %v421_v3 = vmul.f32 %v586_v0, %v420_v2 }
 0x164   :  { %v422_v4 = vadd.f32 %v586_v0, %v421_v3 }
 0x166   :  { %v836_v5 = vsel %vm423_vm4, %v586_v0, %v422_v4 }
 0x1d4   :  { %v362_v33 = vpop.f32.mrf.mxu1 }
 0x1d5   :  { %v368_v34 = vmul.f32 %v362_v33, %v240_v32  ;;  %v574_v33 = vld [vmem:[#allocation10 + $0x8] ss:$0 sm:$0xff] }
 0x1d7   :  { %v370_v36 = vsel %vm146_vm0, %v368_v34, 0.0 }
 0x1d8   :  { %v371_v37 = vrot.slane %v370_v36, 4 }
 0x1da   :  { %v372_v39 = vadd.f32 %v371_v37, %v370_v36  ;;  %v124_v36 = vld [vmem:[#allocation8 + $0x78] sm:$0xff]  ;;  %v123_v37 = vld [vmem:[#allocation8 + $0x30] sm:$0xff] }
 0x1db   :  { %492 = vmatpush.msra.mxu0 %v124_v36 }
 0x1dc   :  { %v365_v40 = vpop.f32.mrf.mxu1  ;;  %v373_v42 = vrot.slane %v372_v39, 2 }
 0x1dd   :  { %v369_v41 = vmul.f32 %v365_v40, %v243_v38  ;;  %493 = vmatpush.msra.mxu0 %v123_v37  ;;  %v575_v38 = vld [vmem:[#allocation10 + $0x5] ss:$0 sm:$0xff] }
 0x1de   :  { %v374_v45 = vadd.f32 %v373_v42, %v372_v39  ;;  %v576_v42 = vld [vmem:[#allocation10 + $0x6] ss:$0 sm:$0xff] }
 0x1df   :  { %v377_v43 = vsel %vm146_vm0, %v369_v41, 0.0 }
 0x1e0   :  { %v378_v44 = vrot.slane %v377_v43, 4  ;;  %v375_v48 = vrot.slane %v374_v45, 1 }
 0x1e2   :  { %v379_v46 = vadd.f32 %v378_v44, %v377_v43  ;;  %v376_v51 = vadd.f32 %v375_v48, %v374_v45 }
 0x1e4   :  { %v380_v47 = vrot.slane %v379_v46, 2 }
 0x1e6   :  { %v381_v49 = vadd.f32 %v380_v47, %v379_v46 }
 0x1e8   :  { %v382_v50 = vrot.slane %v381_v49, 1 }
 0x1ea   :  { %v383_v52 = vadd.f32 %v382_v50, %v381_v49 }
 0x1ec   :  { %v387_v53 = vsel %vm386_vm2, %v383_v52, %v376_v51 }
 0x1ed   :  { %553 = vmatmul.msk.f32.vlgmr.msrb.gmra.mxu2 %vm146_vm0, %v387_v53 }
 0x270   :  { %v407_v57 = vpop.f32.mrf.mxu2 }
 0x271   :  { %v408_v58 = vadd.f32 %v407_v57, %v189_v55 }
 0x273   :  { %v411_v59 = vadd.f32 %v572_v56, %v408_v58 }
 0x275   :  { %v412_v60 = vmax.f32 %v411_v59, 0.0 }
 0x277   :  { %v413_v61 = vadd.f32 %v412_v60, %v807_v9 }
 0x279   :  { %v415_v62 = vsel %vm414_vm3, %v413_v61, 0.0 }
 0x27a   :  { %416 = vadd.xlane.f32.xlu1 %v415_v62 }
 0x2ed   :  { %v417_v6 = vpop.xlane.xlu1 %416 }
 0x2ee   :  { %v425_v7 = vmul.f32 %v836_v5, %v417_v6 }
 0x2f0   :  { %v426_v8 = vsub.f32 %v413_v61, %v425_v7 }
 0x2f2   :  { %v427_v10 = vmul.f32 %v426_v8, %v426_v8 }
 0x2f4   :  { %v428_v9 = vsel %vm414_vm3, %v427_v10, 0.0 }
 0x2f5   :  { %429 = vadd.xlane.f32.xlu1 %v428_v9 }
 0x368   :  { %v430_v18 = vpop.xlane.xlu1 %429 }
 0x369   :  { %v431_v19 = vmul.f32 %v430_v18, %v836_v5 }
 0x36b   :  { %v432_v21 = vadd.f32 1e-05, %v431_v19 }
 0x36d   :  { %587 = vrsqrt.f32 %v432_v21  ;;  %vm439_vm6 = vweird.f32 %v432_v21 }
 0x373   :  { %v588_v24 = vpop.eup %587 }
 0x374   :  { %v434_v25 = vmul.f32 %v588_v24, %v432_v21  ;;  %vm440_vm5 = vweird.f32 %v588_v24 }
 0x375   :  { %vm441_vm7 = vmor %vm439_vm6, %vm440_vm5 }
 0x376   :  { %v435_v26 = vmul.f32 %v588_v24, %v434_v25 }
 0x378   :  { %v436_v27 = vmul.f32 0.5, %v435_v26 }
 0x37a   :  { %v437_v28 = vsub.f32 1.5, %v436_v27 }
 0x37c   :  { %v438_v29 = vmul.f32 %v588_v24, %v437_v28 }
 0x37e   :  { %v442_v31 = vsel %vm441_vm7, %v588_v24, %v438_v29 }
 0x37f   :  { %v443_v32 = vmul.f32 %v442_v31, %v426_v8 }
 0x381   :  { %v445_v34 = vmul.f32 %v573_v30, %v443_v32 }
 0x383   :  { %v447_v35 = vadd.f32 %v574_v33, %v445_v34 }
 0x385   :  { %554 = vmatmul.msk.f32.vlgmr.msrb.gmra.mxu3 %vm146_vm0, %v447_v35 }
 0x408   :  { %v469_v39 = vpop.f32.mrf.mxu3 }
 0x409   :  { %v470_v40 = vadd.f32 %v575_v38, %v469_v39 }
 0x40b   :  { %v472_v41 = vmax.f32 %v470_v40, 0.0 }
 0x40d   :  { %555 = vmatmul.msk.f32.vlgmr.msra.gmra.mxu0 %vm474_vm8, %v472_v41 }
 0x48a   :  { %v495_v43 = vpop.f32.mrf.mxu0 }
 0x48b   :  { %v496_v44 = vadd.f32 %v576_v42, %v495_v43 }
 0x48d   :  { %v498_v45 = vadd.f32 %v496_v44, %v447_v35 }
 0x48f   :  { %v499_v46 = vsel %vm414_vm3, %v498_v45, 0.0 }
 0x490   :  { %500 = vadd.xlane.f32.xlu2 %v499_v46 }
 0x503   :  { %v501_v47 = vpop.xlane.xlu2 %500 }
 0x504   :  { %v502_v48 = vmul.f32 %v501_v47, %v836_v5 }
 0x506   :  { %v503_v49 = vsub.f32 %v498_v45, %v502_v48 }
 0x508   :  { %v504_v50 = vmul.f32 %v503_v49, %v503_v49 }
 0x50a   :  { %v505_v51 = vsel %vm414_vm3, %v504_v50, 0.0 }
 0x50b   :  { %506 = vadd.xlane.f32.xlu2 %v505_v51 }
 0x57e   :  { %v507_v52 = vpop.xlane.xlu2 %506 }
 0x57f   :  { %v508_v53 = vmul.f32 %v507_v52, %v836_v5 }
 0x581   :  { %v509_v54 = vadd.f32 1e-05, %v508_v53 }
 0x583   :  { %589 = vrsqrt.f32 %v509_v54  ;;  %vm516_vm10 = vweird.f32 %v509_v54 }
 0x589   :  { %v590_v55 = vpop.eup %589 }
 0x58a   :  { %v511_v56 = vmul.f32 %v590_v55, %v509_v54  ;;  %vm517_vm9 = vweird.f32 %v590_v55 }
 0x58b   :  { %vm518_vm11 = vmor %vm516_vm10, %vm517_vm9 }
 0x58c   :  { %v512_v57 = vmul.f32 %v590_v55, %v511_v56 }
 0x58e   :  { %v513_v58 = vmul.f32 0.5, %v512_v57 }
 0x590   :  { %v514_v59 = vsub.f32 1.5, %v513_v58 }
 0x592   :  { %v515_v60 = vmul.f32 %v590_v55, %v514_v59 }
 0x594   :  { %v519_v61 = vsel %vm518_vm11, %v590_v55, %v515_v60 }
 0x595   :  { %v520_v62 = vmul.f32 %v519_v61, %v503_v49 }
 0x597   :  { %v521_v63 = vmul.f32 %v573_v30, %v520_v62 }
 0x599   :  { %v522_v0 = vadd.f32 %v574_v33, %v521_v63 }
 0x59b   :  { %523 = vst.msk [vmem:[#allocation11] sm:$0x3] %vm414_vm3, %v522_v0 }
 0x59c   :  { %534 = dma.vmem_to_hbm [thread:$0]  %s530_s4, 32, %s532_s21, [#allocation4]  }
 0x59d   :  { %741 = dma.done.wait [#allocation4], 32  }
 0x59e   :  { %742 = vsyncadd [#allocation4], 4294967264 }
 0x59f   :  { %539 = vsyncpa [#allocation3], 1 }
 0x5a0   :  { %540 = vsyncpa [#allocation6], 1 }
 0x5a1   :  { %541 = vsyncpa [#allocation9], 1 }
 0x5a2   :  { %542 = vsyncpa [#allocation4], 1 }

</bundles_post_ra>
